<compile_context>
chip_gen: v5e
topology: v5e:2x2
jax: 0.10.0
libtpu: 0.0.40
codegen_flags: <defaults>
</compile_context>

<pallas_src>
import functools

import jax
import jax.numpy as jnp
from jax.experimental import pallas as pl
from jax.experimental.pallas import tpu as pltpu


def _sk_attention_kernel(f0_ref, f1_ref, pool_ref, fcT_ref, fcsT_ref, fcsb_ref,
                         expand_ref, v_ref, *, inv_hw):
    # f0_ref / f1_ref / v_ref : (TB, C*HW)   lane-dense feature blocks
    # pool_ref   : (C*HW, C)  0/1 channel-pooling matrix
    # fcT_ref    : (C, d)     fc weight, pre-transposed, f32
    # fcsT_ref   : (d, 2C)    fcs weight, both branches fused, pre-transposed, f32
    # fcsb_ref   : (1, 2C)    fcs bias, both branches fused, f32
    # expand_ref : (C, C*HW)  0/1 channel-broadcast matrix
    C = fcT_ref.shape[0]

    f0 = f0_ref[...]                      # (TB, CHW), native dtype
    f1 = f1_ref[...]

    # ---- pooled per-channel mean: z[b, c] = mean_hw (f0 + f1) -------------
    # Each dot is a per-channel spatial sum on the MXU (f32 accumulate); no
    # (TB, CHW) `f0 + f1` temporary is materialized.
    zsum = (jnp.dot(f0, pool_ref[...], preferred_element_type=jnp.float32) +
            jnp.dot(f1, pool_ref[...], preferred_element_type=jnp.float32))
    z = zsum * inv_hw                                            # (TB, C) f32

    # ---- fc (C -> d, no bias) then fcs (d -> 2C, bias), branches fused ----
    z2 = jnp.dot(z, fcT_ref[...], preferred_element_type=jnp.float32)    # (TB, d)
    a = jnp.dot(z2, fcsT_ref[...], preferred_element_type=jnp.float32)
    a = a + fcsb_ref[...]                                        # (TB, 2C)

    # ---- softmax over the branch dimension (M = 2) -------------------------
    a0 = a[:, :C]                                                # branch 0
    a1 = a[:, C:]                                                # branch 1
    m = jnp.maximum(a0, a1)
    e0 = jnp.exp(a0 - m)
    e1 = jnp.exp(a1 - m)
    inv = pl.reciprocal(e0 + e1, approx=False)   # exact; tiny array, keeps 1e-5 tol
    w0 = e0 * inv                                                # (TB, C) f32
    w1 = e1 * inv

    # ---- broadcast per-channel weights to (TB, C*HW) via the MXU and fuse --
    ew = f0.dtype            # bf16 features stay bf16 on the elementwise path
    w0e = jnp.dot(w0.astype(ew), expand_ref[...],
                  preferred_element_type=jnp.float32).astype(ew)
    w1e = jnp.dot(w1.astype(ew), expand_ref[...],
                  preferred_element_type=jnp.float32).astype(ew)
    v_ref[...] = (f0 * w0e + f1 * w1e).astype(v_ref.dtype)


def _vmem_capacity_bytes():
    """Physical VMEM per core; conservative 64 MiB (v7x) fallback."""
    try:
        info = pltpu.get_tpu_info()
        cap = getattr(info, "vmem_capacity_bytes", None)
        if cap:
            return int(cap)
    except Exception:
        pass
    return 64 << 20


def _pick_tb(batch, per_row_bytes, block_budget):
    """Largest sublane-friendly batch tile that fits VMEM and keeps a multi-step grid."""
    cap = max(1, block_budget // max(per_row_bytes, 1))
    divisors = [t for t in range(1, batch + 1) if batch % t == 0]
    # Sublane-friendly tiles only: multiple of 8 (dense packing) or the full
    # batch (block dim == array dim), so the (8,128) block constraint holds.
    friendly = [t for t in divisors if t % 8 == 0 or t == batch]
    # Prefer >= 4 grid steps (pipelining), then >= 2 (v7x megacore), then 1.
    for want_steps in (4, 2, 1):
        ok = [t for t in friendly if t <= cap and batch // t >= want_steps]
        if ok:
            return max(ok)
    return min(friendly)


def sk_attention(feat0, feat1, fc_w, fcs_w, fcs_b, *, tb=None):
    """feat0/feat1: (B, C, H, W).  fc_w: (d, C).  fcs_w: (M*C, d).  fcs_b: (M*C,)."""
    B, C, H, W = feat0.shape
    HW = H * W
    CHW = C * HW
    d = fc_w.shape[0]
    feat_dtype = feat0.dtype
    itemsize = jnp.dtype(feat_dtype).itemsize

    # ---- host-side layout plumbing (zero runtime cost) ---------------------
    f0 = feat0.reshape(B, CHW)
    f1 = feat1.reshape(B, CHW)
    fcT = fc_w.T.astype(jnp.float32)                       # (C, d)
    fcsT = fcs_w.T.astype(jnp.float32)                     # (d, 2C)
    fcsb = fcs_b.reshape(1, 2 * C).astype(jnp.float32)     # (1, 2C)
    # 0/1 channel-broadcast / channel-pool selection matrices, in the feature
    # dtype so the MXU runs its native path without upcasting f0/f1.
    expand_mat = jnp.repeat(jnp.eye(C, dtype=feat_dtype), HW, axis=1)   # (C, CHW)
    pool_mat = expand_mat.T                                             # (CHW, C)

    # ---- VMEM budgeting -----------------------------------------------------
    vmem_cap = _vmem_capacity_bytes()
    # Explicit scoped-VMEM limit with headroom below physical capacity:
    #   128-MiB parts (v5e/v6e) -> 96 MiB, 64-MiB parts (v7x) -> 48 MiB.
    vmem_limit = int(max(min(vmem_cap - (16 << 20), 96 << 20), 16 << 20))

    weight_bytes = 2 * ((pool_mat.size + expand_mat.size) * itemsize
                        + (fcT.size + fcsT.size + fcsb.size) * 4)
    block_budget = max(vmem_limit - weight_bytes - (2 << 20), 1 << 20)
    # Per batch-row VMEM: 3 blocks (f0, f1, out) double-buffered in the input
    # dtype + ~3 f32 block-sized in-kernel temporaries (expanded weights, sum).
    per_row = CHW * (6 * itemsize + 3 * 4)

    if tb is None:
        tb = _pick_tb(B, per_row, block_budget)
    assert B % tb == 0, "batch tile must divide the batch"
    grid = (B // tb,)

    grid_spec = pltpu.PrefetchScalarGridSpec(
        num_scalar_prefetch=0,
        grid=grid,
        in_specs=[
            pl.BlockSpec((tb, CHW), lambda i: (i, 0)),        # feat0 (flattened)
            pl.BlockSpec((tb, CHW), lambda i: (i, 0)),        # feat1 (flattened)
            pl.BlockSpec((CHW, C), lambda i: (0, 0)),         # pooling matrix
            pl.BlockSpec((C, d), lambda i: (0, 0)),           # fc weight (pre-T)
            pl.BlockSpec((d, 2 * C), lambda i: (0, 0)),       # fcs weight (fused, pre-T)
            pl.BlockSpec((1, 2 * C), lambda i: (0, 0)),       # fcs bias (fused)
            pl.BlockSpec((C, CHW), lambda i: (0, 0)),         # broadcast matrix
        ],
        out_specs=pl.BlockSpec((tb, CHW), lambda i: (i, 0)),
    )

    out = pl.pallas_call(
        functools.partial(_sk_attention_kernel, inv_hw=1.0 / HW),
        out_shape=jax.ShapeDtypeStruct((B, CHW), feat_dtype),
        grid_spec=grid_spec,
        compiler_params=pltpu.CompilerParams(
            # Batches are independent -> parallel (megacore sharding on v7x,
            # neutral on single-TC v5e/v6e).
            dimension_semantics=("parallel",),
            vmem_limit_bytes=vmem_limit,
        ),
    )(f0, f1, pool_mat, fcT, fcsT, fcsb, expand_mat)

    return out.reshape(B, C, H, W)


def sk_attention_ref(feat0, feat1, fc_w, fcs_w, fcs_b):
    """Pure-JAX reference mirroring the PyTorch forward exactly."""
    B, C, H, W = feat0.shape
    M = 2
    U = jnp.stack([feat0, feat1], axis=1)                # (B, M, C, H, W)
    S = U.sum(axis=1)                                    # (B, C, H, W)
    z = S.mean(-1).mean(-1)                              # (B, C)
    z = z @ fc_w.T                                       # (B, d)
    a = z @ fcs_w.T + fcs_b                              # (B, M*C)
    a = a.reshape(B, M, C)
    a = jax.nn.softmax(a, axis=1)
    a = a.reshape(B, M, C, 1, 1)
    return (U * a).sum(axis=1)


if __name__ == "__main__":
    # Small shapes consistent with the module: channels=4, M=2, G=32, reduction=16
    B, C, H, W = 2, 4, 16, 16
    M, G, reduction = 2, 32, 16
    d = max(C // reduction, G)                           # = 32

    key = jax.random.PRNGKey(0)
    k0, k1, k2, k3, k4 = jax.random.split(key, 5)

    feat0 = jax.random.normal(k0, (B, C, H, W), dtype=jnp.float32)
    feat1 = jax.random.normal(k1, (B, C, H, W), dtype=jnp.float32)

    # Deterministic synthetic parameters (shapes match nn.Linear weights).
    fc_w = jax.random.normal(k2, (d, C), dtype=jnp.float32) * 0.1        # fc.weight
    fcs_w = jax.random.normal(k3, (M * C, d), dtype=jnp.float32) * 0.1   # fcs.weight
    fcs_b = jax.random.normal(k4, (M * C,), dtype=jnp.float32) * 0.1     # fcs.bias

    out = sk_attention(feat0, feat1, fc_w, fcs_w, fcs_b)
    out = jax.block_until_ready(out)

    ref = sk_attention_ref(feat0, feat1, fc_w, fcs_w, fcs_b)
    assert out.shape == (B, C, H, W)
    assert jnp.allclose(out, ref, atol=1e-5, rtol=1e-5), "Pallas kernel mismatch vs reference"

    print("KERNEL_OK")
</pallas_src>

<mosaic_0001>
module attributes {stable_mosaic.version = 11 : i64} {
  func.func @_sk_attention_kernel(%arg0: i32, %arg1: memref<2x1024xf32, #tpu.memory_space<vmem>>, %arg2: memref<2x1024xf32, #tpu.memory_space<vmem>>, %arg3: memref<1024x4xf32, #tpu.memory_space<vmem>>, %arg4: memref<4x32xf32, #tpu.memory_space<vmem>>, %arg5: memref<32x8xf32, #tpu.memory_space<vmem>>, %arg6: memref<1x8xf32, #tpu.memory_space<vmem>>, %arg7: memref<4x1024xf32, #tpu.memory_space<vmem>>, %arg8: memref<2x1024xf32, #tpu.memory_space<vmem>>) attributes {dimension_semantics = [#tpu.dimension_semantics<parallel>], iteration_bounds = array<i64: 1>, scalar_prefetch = 0 : i64, scratch_operands = 0 : i64, tpu.core_type = #tpu.core_type<tc>, window_params = [{transform_indices = @transform_0, window_bounds = array<i64: 2, 1024>}, {transform_indices = @transform_1, window_bounds = array<i64: 2, 1024>}, {pipeline_mode = #tpu.pipeline_mode<synchronous>, transform_indices = @transform_2, window_bounds = array<i64: 1024, 4>}, {pipeline_mode = #tpu.pipeline_mode<synchronous>, transform_indices = @transform_3, window_bounds = array<i64: 4, 32>}, {pipeline_mode = #tpu.pipeline_mode<synchronous>, transform_indices = @transform_4, window_bounds = array<i64: 32, 8>}, {pipeline_mode = #tpu.pipeline_mode<synchronous>, transform_indices = @transform_5, window_bounds = array<i64: 1, 8>}, {pipeline_mode = #tpu.pipeline_mode<synchronous>, transform_indices = @transform_6, window_bounds = array<i64: 4, 1024>}, {transform_indices = @transform_7, window_bounds = array<i64: 2, 1024>}]} {
    %c0 = arith.constant 0 : index
    %c0_0 = arith.constant 0 : index
    %0 = vector.load %arg1[%c0, %c0_0] : memref<2x1024xf32, #tpu.memory_space<vmem>>, vector<2x1024xf32>
    %c0_1 = arith.constant 0 : index
    %c0_2 = arith.constant 0 : index
    %1 = vector.load %arg2[%c0_1, %c0_2] : memref<2x1024xf32, #tpu.memory_space<vmem>>, vector<2x1024xf32>
    %c0_3 = arith.constant 0 : index
    %c0_4 = arith.constant 0 : index
    %2 = vector.load %arg3[%c0_3, %c0_4] : memref<1024x4xf32, #tpu.memory_space<vmem>>, vector<1024x4xf32>
    %cst = arith.constant dense<0.000000e+00> : vector<2x4xf32>
    %3 = tpu.matmul %0, %2, %cst {dimension_numbers = #tpu.dot_dimension_numbers<[1], [0], [0], [1], [0, 0, 1, 1], [], []>} : vector<2x1024xf32>, vector<1024x4xf32>, vector<2x4xf32> -> vector<2x4xf32>
    %c0_5 = arith.constant 0 : index
    %c0_6 = arith.constant 0 : index
    %4 = vector.load %arg3[%c0_5, %c0_6] : memref<1024x4xf32, #tpu.memory_space<vmem>>, vector<1024x4xf32>
    %cst_7 = arith.constant dense<0.000000e+00> : vector<2x4xf32>
    %5 = tpu.matmul %1, %4, %cst_7 {dimension_numbers = #tpu.dot_dimension_numbers<[1], [0], [0], [1], [0, 0, 1, 1], [], []>} : vector<2x1024xf32>, vector<1024x4xf32>, vector<2x4xf32> -> vector<2x4xf32>
    %6 = arith.addf %3, %5 : vector<2x4xf32>
    %cst_8 = arith.constant 3.906250e-03 : f32
    %7 = vector.broadcast %cst_8 : f32 to vector<2x4xf32>
    %8 = arith.mulf %6, %7 : vector<2x4xf32>
    %c0_9 = arith.constant 0 : index
    %c0_10 = arith.constant 0 : index
    %9 = vector.load %arg4[%c0_9, %c0_10] : memref<4x32xf32, #tpu.memory_space<vmem>>, vector<4x32xf32>
    %cst_11 = arith.constant dense<0.000000e+00> : vector<2x32xf32>
    %10 = tpu.matmul %8, %9, %cst_11 {dimension_numbers = #tpu.dot_dimension_numbers<[1], [0], [0], [1], [0, 0, 1, 1], [], []>} : vector<2x4xf32>, vector<4x32xf32>, vector<2x32xf32> -> vector<2x32xf32>
    %c0_12 = arith.constant 0 : index
    %c0_13 = arith.constant 0 : index
    %11 = vector.load %arg5[%c0_12, %c0_13] : memref<32x8xf32, #tpu.memory_space<vmem>>, vector<32x8xf32>
    %cst_14 = arith.constant dense<0.000000e+00> : vector<2x8xf32>
    %12 = tpu.matmul %10, %11, %cst_14 {dimension_numbers = #tpu.dot_dimension_numbers<[1], [0], [0], [1], [0, 0, 1, 1], [], []>} : vector<2x32xf32>, vector<32x8xf32>, vector<2x8xf32> -> vector<2x8xf32>
    %c0_15 = arith.constant 0 : index
    %c0_16 = arith.constant 0 : index
    %13 = vector.load %arg6[%c0_15, %c0_16] : memref<1x8xf32, #tpu.memory_space<vmem>>, vector<1x8xf32>
    %14 = vector.broadcast %13 : vector<1x8xf32> to vector<2x8xf32>
    %15 = arith.addf %12, %14 : vector<2x8xf32>
    %16 = vector.extract_strided_slice %15 {offsets = [0, 0], sizes = [2, 4], strides = [1, 1]} : vector<2x8xf32> to vector<2x4xf32>
    %17 = vector.extract_strided_slice %15 {offsets = [0, 4], sizes = [2, 4], strides = [1, 1]} : vector<2x8xf32> to vector<2x4xf32>
    %18 = arith.maximumf %16, %17 : vector<2x4xf32>
    %19 = arith.subf %16, %18 : vector<2x4xf32>
    %20 = math.exp %19 : vector<2x4xf32>
    %21 = arith.subf %17, %18 : vector<2x4xf32>
    %22 = math.exp %21 : vector<2x4xf32>
    %23 = arith.addf %20, %22 : vector<2x4xf32>
    %24 = tpu.reciprocal %23 : vector<2x4xf32> -> vector<2x4xf32>
    %25 = arith.mulf %20, %24 : vector<2x4xf32>
    %26 = arith.mulf %22, %24 : vector<2x4xf32>
    %c0_17 = arith.constant 0 : index
    %c0_18 = arith.constant 0 : index
    %27 = vector.load %arg7[%c0_17, %c0_18] : memref<4x1024xf32, #tpu.memory_space<vmem>>, vector<4x1024xf32>
    %cst_19 = arith.constant dense<0.000000e+00> : vector<2x1024xf32>
    %28 = tpu.matmul %25, %27, %cst_19 {dimension_numbers = #tpu.dot_dimension_numbers<[1], [0], [0], [1], [0, 0, 1, 1], [], []>} : vector<2x4xf32>, vector<4x1024xf32>, vector<2x1024xf32> -> vector<2x1024xf32>
    %c0_20 = arith.constant 0 : index
    %c0_21 = arith.constant 0 : index
    %29 = vector.load %arg7[%c0_20, %c0_21] : memref<4x1024xf32, #tpu.memory_space<vmem>>, vector<4x1024xf32>
    %cst_22 = arith.constant dense<0.000000e+00> : vector<2x1024xf32>
    %30 = tpu.matmul %26, %29, %cst_22 {dimension_numbers = #tpu.dot_dimension_numbers<[1], [0], [0], [1], [0, 0, 1, 1], [], []>} : vector<2x4xf32>, vector<4x1024xf32>, vector<2x1024xf32> -> vector<2x1024xf32>
    %31 = arith.mulf %0, %28 : vector<2x1024xf32>
    %32 = arith.mulf %1, %30 : vector<2x1024xf32>
    %33 = arith.addf %31, %32 : vector<2x1024xf32>
    %c0_23 = arith.constant 0 : index
    %c0_24 = arith.constant 0 : index
    %34 = vector.load %arg8[%c0_23, %c0_24] : memref<2x1024xf32, #tpu.memory_space<vmem>>, vector<2x1024xf32>
    tpu.vector_store %arg8[%c0_23, %c0_24], %33 {strides = array<i32>} : memref<2x1024xf32, #tpu.memory_space<vmem>>, vector<2x1024xf32>,
    return
  }
  func.func @transform_0(%arg0: i32) -> (i32, i32) {
    %c0_i32 = arith.constant 0 : i32
    %c0_i32_0 = arith.constant 0 : i32
    return %arg0, %c0_i32 : i32, i32
  }
  func.func @transform_1(%arg0: i32) -> (i32, i32) {
    %c0_i32 = arith.constant 0 : i32
    %c0_i32_0 = arith.constant 0 : i32
    return %arg0, %c0_i32 : i32, i32
  }
  func.func @transform_2(%arg0: i32) -> (i32, i32) {
    %c0_i32 = arith.constant 0 : i32
    %c0_i32_0 = arith.constant 0 : i32
    %c0_i32_1 = arith.constant 0 : i32
    return %c0_i32, %c0_i32_0 : i32, i32
  }
  func.func @transform_3(%arg0: i32) -> (i32, i32) {
    %c0_i32 = arith.constant 0 : i32
    %c0_i32_0 = arith.constant 0 : i32
    %c0_i32_1 = arith.constant 0 : i32
    return %c0_i32, %c0_i32_0 : i32, i32
  }
  func.func @transform_4(%arg0: i32) -> (i32, i32) {
    %c0_i32 = arith.constant 0 : i32
    %c0_i32_0 = arith.constant 0 : i32
    %c0_i32_1 = arith.constant 0 : i32
    return %c0_i32, %c0_i32_0 : i32, i32
  }
  func.func @transform_5(%arg0: i32) -> (i32, i32) {
    %c0_i32 = arith.constant 0 : i32
    %c0_i32_0 = arith.constant 0 : i32
    %c0_i32_1 = arith.constant 0 : i32
    return %c0_i32, %c0_i32_0 : i32, i32
  }
  func.func @transform_6(%arg0: i32) -> (i32, i32) {
    %c0_i32 = arith.constant 0 : i32
    %c0_i32_0 = arith.constant 0 : i32
    %c0_i32_1 = arith.constant 0 : i32
    return %c0_i32, %c0_i32_0 : i32, i32
  }
  func.func @transform_7(%arg0: i32) -> (i32, i32) {
    %c0_i32 = arith.constant 0 : i32
    %c0_i32_0 = arith.constant 0 : i32
    return %arg0, %c0_i32 : i32, i32
  }
}

</mosaic_0001>

<bundles_post_ra>
// kernel: tpu_custom_call.1
= control target key start
LH: loop header
LB: loop body
LE: loop exit
PB: predicated region body
PF: predicated region fallthrough
CT: control target
= control target key end

     0   :  { %s2259_s0 = inlined_call_operand.vmem [shape: f32[2,1024], index: 0, kind: input, shape index: {}]   ;;  %s2260_s1 = inlined_call_operand.vmem [shape: f32[2,1024], index: 1, kind: input, shape index: {}]   ;;  %s2261_s2 = inlined_call_operand.vmem [shape: f32[1024,4], index: 2, kind: input, shape index: {}]   ;;  %s2262_s3 = inlined_call_operand.vmem [shape: f32[4,32], index: 3, kind: input, shape index: {}]   ;;  %s2263_s4 = inlined_call_operand.vmem [shape: f32[32,8], index: 4, kind: input, shape index: {}]   ;;  %s2264_s5 = inlined_call_operand.vmem [shape: f32[1,8], index: 5, kind: input, shape index: {}]   ;;  %s2265_s6 = inlined_call_operand.vmem [shape: f32[4,1024], index: 6, kind: input, shape index: {}]   ;;  %s2266_s7 = inlined_call_operand.hbm [shape: f32[2,1024], index: 7, kind: output, shape index: {}]  }
   0x1   :  { %v1208_v0 = vld [vmem:[%s2261_s2 + $0x78] sm:$0xff]  ;;  %v1218_v2 = vld [vmem:[%s2261_s2 + $0x70] sm:$0xff]  ;;  %v1242_v6 = vld [vmem:[%s2261_s2 + $0x68] sm:$0xff] }
   0x2   :  { %v1213_v1 = vld [vmem:[%s2261_s2 + $0x178] sm:$0xff]  ;;  %180 = vmatpush.msra.mxu0 %v1208_v0  ;;  %v1230_v4 = vld [vmem:[%s2261_s2 + $0x170] sm:$0xff]  ;;  %v1252_v8 = vld [vmem:[%s2261_s2 + $0x168] sm:$0xff] }
   0x3   :  { %220 = vmatpush.msra.mxu2 %v1213_v1  ;;  %v1225_v3 = vld [vmem:[%s2261_s2 + $0xf8] sm:$0xff]  ;;  %v1247_v7 = vld [vmem:[%s2261_s2 + $0xf0] sm:$0xff]  ;;  %v1264_v10 = vld [vmem:[%s2261_s2 + $0xe8] sm:$0xff] }
   0x4   :  { %v1235_v5 = vld [vmem:[%s2261_s2 + $0x1f8] sm:$0xff]  ;;  %200 = vmatpush.msra.mxu1 %v1225_v3  ;;  %181 = vmatpush.msra.mxu0 %v1218_v2  ;;  %v1259_v9 = vld [vmem:[%s2261_s2 + $0x1f0] sm:$0xff]  ;;  %v1271_v11 = vld [vmem:[%s2261_s2 + $0x60] sm:$0xff] }
   0x5   :  { %240 = vmatpush.msra.mxu3 %v1235_v5  ;;  %221 = vmatpush.msra.mxu2 %v1230_v4  ;;  %v1276_v12 = vld [vmem:[%s2261_s2 + $0x160] sm:$0xff]  ;;  %v1281_v13 = vld [vmem:[%s2261_s2 + $0x1e8] sm:$0xff]  ;;  %v1300_v16 = vld [vmem:[%s2261_s2 + $0x58] sm:$0xff] }
   0x6   :  { %201 = vmatpush.msra.mxu1 %v1247_v7  ;;  %182 = vmatpush.msra.mxu0 %v1242_v6  ;;  %v1288_v14 = vld [vmem:[%s2261_s2 + $0xe0] sm:$0xff]  ;;  %v1305_v17 = vld [vmem:[%s2261_s2 + $0x158] sm:$0xff]  ;;  %v1324_v20 = vld [vmem:[%s2261_s2 + $0x50] sm:$0xff] }
   0x7   :  { %241 = vmatpush.msra.mxu3 %v1259_v9  ;;  %222 = vmatpush.msra.mxu2 %v1252_v8  ;;  %v1293_v15 = vld [vmem:[%s2261_s2 + $0x1e0] sm:$0xff]  ;;  %v1312_v18 = vld [vmem:[%s2261_s2 + $0xd8] sm:$0xff]  ;;  %v1329_v21 = vld [vmem:[%s2261_s2 + $0x150] sm:$0xff] }
   0x8   :  { %202 = vmatpush.msra.mxu1 %v1264_v10  ;;  %183 = vmatpush.msra.mxu0 %v1271_v11  ;;  %v1317_v19 = vld [vmem:[%s2261_s2 + $0x1d8] sm:$0xff]  ;;  %v1336_v22 = vld [vmem:[%s2261_s2 + $0xd0] sm:$0xff]  ;;  %v1348_v24 = vld [vmem:[%s2261_s2 + $0x48] sm:$0xff] }
   0x9   :  { %242 = vmatpush.msra.mxu3 %v1281_v13  ;;  %223 = vmatpush.msra.mxu2 %v1276_v12  ;;  %v1341_v23 = vld [vmem:[%s2261_s2 + $0x1d0] sm:$0xff]  ;;  %v1353_v25 = vld [vmem:[%s2261_s2 + $0x148] sm:$0xff]  ;;  %v1372_v28 = vld [vmem:[%s2261_s2 + $0x40] sm:$0xff] }
   0xa   :  { %203 = vmatpush.msra.mxu1 %v1288_v14  ;;  %184 = vmatpush.msra.mxu0 %v1300_v16  ;;  %v1360_v26 = vld [vmem:[%s2261_s2 + $0xc8] sm:$0xff]  ;;  %v1377_v29 = vld [vmem:[%s2261_s2 + $0x140] sm:$0xff]  ;;  %v1396_v32 = vld [vmem:[%s2261_s2 + $0x38] sm:$0xff] }
   0xb   :  { %243 = vmatpush.msra.mxu3 %v1293_v15  ;;  %224 = vmatpush.msra.mxu2 %v1305_v17  ;;  %v1365_v27 = vld [vmem:[%s2261_s2 + $0x1c8] sm:$0xff]  ;;  %v1384_v30 = vld [vmem:[%s2261_s2 + $0xc0] sm:$0xff]  ;;  %v1401_v33 = vld [vmem:[%s2261_s2 + $0x138] sm:$0xff] }
   0xc   :  { %204 = vmatpush.msra.mxu1 %v1312_v18  ;;  %185 = vmatpush.msra.mxu0 %v1324_v20  ;;  %v1389_v31 = vld [vmem:[%s2261_s2 + $0x1c0] sm:$0xff]  ;;  %v1408_v34 = vld [vmem:[%s2261_s2 + $0xb8] sm:$0xff]  ;;  %v1420_v36 = vld [vmem:[%s2261_s2 + $0x30] sm:$0xff] }
   0xd   :  { %244 = vmatpush.msra.mxu3 %v1317_v19  ;;  %225 = vmatpush.msra.mxu2 %v1329_v21  ;;  %v1413_v35 = vld [vmem:[%s2261_s2 + $0x1b8] sm:$0xff]  ;;  %v1425_v37 = vld [vmem:[%s2261_s2 + $0x130] sm:$0xff]  ;;  %v1444_v40 = vld [vmem:[%s2261_s2 + $0x28] sm:$0xff] }
   0xe   :  { %205 = vmatpush.msra.mxu1 %v1336_v22  ;;  %186 = vmatpush.msra.mxu0 %v1348_v24  ;;  %v1432_v38 = vld [vmem:[%s2261_s2 + $0xb0] sm:$0xff]  ;;  %v1449_v41 = vld [vmem:[%s2261_s2 + $0x128] sm:$0xff]  ;;  %v1468_v44 = vld [vmem:[%s2261_s2 + $0x20] sm:$0xff] }
   0xf   :  { %245 = vmatpush.msra.mxu3 %v1341_v23  ;;  %226 = vmatpush.msra.mxu2 %v1353_v25  ;;  %v1437_v39 = vld [vmem:[%s2261_s2 + $0x1b0] sm:$0xff]  ;;  %v1456_v42 = vld [vmem:[%s2261_s2 + $0xa8] sm:$0xff]  ;;  %v1473_v45 = vld [vmem:[%s2261_s2 + $0x120] sm:$0xff] }
  0x10   :  { %206 = vmatpush.msra.mxu1 %v1360_v26  ;;  %187 = vmatpush.msra.mxu0 %v1372_v28  ;;  %v1461_v43 = vld [vmem:[%s2261_s2 + $0x1a8] sm:$0xff]  ;;  %v1480_v46 = vld [vmem:[%s2261_s2 + $0xa0] sm:$0xff]  ;;  %v1492_v48 = vld [vmem:[%s2261_s2 + $0x18] sm:$0xff] }
  0x11   :  { %246 = vmatpush.msra.mxu3 %v1365_v27  ;;  %227 = vmatpush.msra.mxu2 %v1377_v29  ;;  %2343 = vst [vmem:[#allocation5_spill] sm:$0xff] %v1461_v43  ;;  %v1485_v47 = vld [vmem:[%s2261_s2 + $0x1a0] sm:$0xff]  ;;  %v1497_v49 = vld [vmem:[%s2261_s2 + $0x118] sm:$0xff]  ;;  %v1516_v52 = vld [vmem:[%s2261_s2 + $0x10] sm:$0xff] }
  0x12   :  { %207 = vmatpush.msra.mxu1 %v1384_v30  ;;  %188 = vmatpush.msra.mxu0 %v1396_v32  ;;  %2344 = vst [vmem:[#allocation6_spill] sm:$0xff] %v1480_v46  ;;  %v1504_v50 = vld [vmem:[%s2261_s2 + $0x98] sm:$0xff]  ;;  %v1521_v53 = vld [vmem:[%s2261_s2 + $0x110] sm:$0xff]  ;;  %v1540_v56 = vld [vmem:[%s2261_s2 + $0x8] sm:$0xff] }
  0x13   :  { %247 = vmatpush.msra.mxu3 %v1389_v31  ;;  %228 = vmatpush.msra.mxu2 %v1401_v33  ;;  %2345 = vst [vmem:[#allocation7_spill] sm:$0xff] %v1485_v47  ;;  %v1509_v51 = vld [vmem:[%s2261_s2 + $0x198] sm:$0xff]  ;;  %v1528_v54 = vld [vmem:[%s2261_s2 + $0x90] sm:$0xff]  ;;  %v1545_v57 = vld [vmem:[%s2261_s2 + $0x108] sm:$0xff] }
  0x14   :  { %208 = vmatpush.msra.mxu1 %v1408_v34  ;;  %189 = vmatpush.msra.mxu0 %v1420_v36  ;;  %2346 = vst [vmem:[#allocation8_spill] sm:$0xff] %v1492_v48  ;;  %v1533_v55 = vld [vmem:[%s2261_s2 + $0x190] sm:$0xff]  ;;  %v1552_v58 = vld [vmem:[%s2261_s2 + $0x88] sm:$0xff]  ;;  %v1564_v60 = vld [vmem:[%s2261_s2] sm:$0xff] }
  0x15   :  { %248 = vmatpush.msra.mxu3 %v1413_v35  ;;  %229 = vmatpush.msra.mxu2 %v1425_v37  ;;  %2347 = vst [vmem:[#allocation9_spill] sm:$0xff] %v1497_v49  ;;  %v1557_v59 = vld [vmem:[%s2261_s2 + $0x188] sm:$0xff]  ;;  %v1569_v61 = vld [vmem:[%s2261_s2 + $0x100] sm:$0xff]  ;;  %v1576_v62 = vld [vmem:[%s2261_s2 + $0x278] sm:$0xff] }
  0x16   :  { %209 = vmatpush.msra.mxu1 %v1432_v38  ;;  %190 = vmatpush.msra.mxu0 %v1444_v40  ;;  %2348 = vst [vmem:[#allocation10_spill] sm:$0xff] %v1504_v50  ;;  %v1581_v63 = vld [vmem:[%s2261_s2 + $0x378] sm:$0xff] }
  0x17   :  { %249 = vmatpush.msra.mxu3 %v1437_v39  ;;  %230 = vmatpush.msra.mxu2 %v1449_v41  ;;  %2349 = vst [vmem:[#allocation11_spill] sm:$0xff] %v1509_v51 }
  0x18   :  { %210 = vmatpush.msra.mxu1 %v1456_v42  ;;  %191 = vmatpush.msra.mxu0 %v1468_v44  ;;  %2350 = vst [vmem:[#allocation12_spill] sm:$0xff] %v1516_v52 }
  0x19   :  { %250 = vmatpush.msra.mxu3 %v1461_v43  ;;  %231 = vmatpush.msra.mxu2 %v1473_v45  ;;  %2351 = vst [vmem:[#allocation13_spill] sm:$0xff] %v1521_v53 }
  0x1a   :  { %211 = vmatpush.msra.mxu1 %v1480_v46  ;;  %192 = vmatpush.msra.mxu0 %v1492_v48  ;;  %2352 = vst [vmem:[#allocation14_spill] sm:$0xff] %v1528_v54 }
  0x1b   :  { %251 = vmatpush.msra.mxu3 %v1485_v47  ;;  %232 = vmatpush.msra.mxu2 %v1497_v49  ;;  %2353 = vst [vmem:[#allocation15_spill] sm:$0xff] %v1533_v55 }
  0x1c   :  { %212 = vmatpush.msra.mxu1 %v1504_v50  ;;  %2354 = vst [vmem:[#allocation16_spill] sm:$0xff] %v1540_v56  ;;  %193 = vmatpush.msra.mxu0 %v1516_v52 }
  0x1d   :  { %252 = vmatpush.msra.mxu3 %v1509_v51  ;;  %2355 = vst [vmem:[#allocation17_spill] sm:$0xff] %v1545_v57  ;;  %233 = vmatpush.msra.mxu2 %v1521_v53  ;;  %v1740_v51 = vld [vmem:[%s2261_s2 + $0x3d0] sm:$0xff]  ;;  %v1758_v53 = vld [vmem:[%s2261_s2 + $0x340] sm:$0xff] }
  0x1e   :  { %2356 = vst [vmem:[#allocation18_spill] sm:$0xff] %v1552_v58  ;;  %213 = vmatpush.msra.mxu1 %v1528_v54  ;;  %194 = vmatpush.msra.mxu0 %v1540_v56  ;;  %v1706_v54 = vld [vmem:[%s2261_s2 + $0x350] sm:$0xff]  ;;  %v1723_v56 = vld [vmem:[%s2260_s1] sm:$0xff] }
  0x1f   :  { %2357 = vst [vmem:[#allocation19_spill] sm:$0xff] %v1557_v59  ;;  %253 = vmatpush.msra.mxu3 %v1533_v55  ;;  %234 = vmatpush.msra.mxu2 %v1545_v57  ;;  %v1588_v55 = vld [vmem:[%s2261_s2 + $0x80] sm:$0xff] }
  0x20   :  { %2358 = vst [vmem:[#allocation20_spill] sm:$0xff] %v1564_v60  ;;  %214 = vmatpush.msra.mxu1 %v1552_v58  ;;  %v1593_v57 = vld [vmem:[%s2261_s2 + $0x180] sm:$0xff]  ;;  %195 = vmatpush.msra.mxu0 %v1564_v60  ;;  %v1600_v58 = vld [vmem:[%s2261_s2 + $0x270] sm:$0xff] }
  0x21   :  { %2359 = vst [vmem:[#allocation21_spill] sm:$0xff] %v1569_v61  ;;  %254 = vmatpush.msra.mxu3 %v1557_v59  ;;  %235 = vmatpush.msra.mxu2 %v1569_v61  ;;  %v1605_v59 = vld [vmem:[%s2261_s2 + $0x2f8] sm:$0xff]  ;;  %v1612_v60 = vld [vmem:[%s2261_s2 + $0x370] sm:$0xff] }
  0x22   :  { %2360 = vst [vmem:[#allocation22_spill] sm:$0xff] %v1576_v62  ;;  %260 = vmatpush.msrb.mxu0 %v1576_v62  ;;  %v1617_v61 = vld [vmem:[%s2261_s2 + $0x3f8] sm:$0xff]  ;;  %215 = vmatpush.msra.mxu1 %v1588_v55  ;;  %v1624_v62 = vld [vmem:[%s2261_s2 + $0x268] sm:$0xff] }
  0x23   :  { %2361 = vst [vmem:[#allocation23_spill] sm:$0xff] %v1581_v63  ;;  %300 = vmatpush.msrb.mxu2 %v1581_v63  ;;  %255 = vmatpush.msra.mxu3 %v1593_v57  ;;  %v1629_v63 = vld [vmem:[%s2261_s2 + $0x2f0] sm:$0xff] }
  0x24   :  { %2362 = vst [vmem:[#allocation24_spill] sm:$0xff] %v1588_v55  ;;  %261 = vmatpush.msrb.mxu0 %v1600_v58  ;;  %280 = vmatpush.msrb.mxu1 %v1605_v59  ;;  %v1636_v55 = vld [vmem:[%s2261_s2 + $0x368] sm:$0xff] }
  0x25   :  { %2363 = vst [vmem:[#allocation25_spill] sm:$0xff] %v1593_v57  ;;  %v1641_v57 = vld [vmem:[%s2261_s2 + $0x3f0] sm:$0xff]  ;;  %301 = vmatpush.msrb.mxu2 %v1612_v60  ;;  %320 = vmatpush.msrb.mxu3 %v1617_v61 }
  0x26   :  { %2364 = vst [vmem:[#allocation26_spill] sm:$0xff] %v1600_v58  ;;  %v1648_v58 = vld [vmem:[%s2261_s2 + $0x260] sm:$0xff]  ;;  %262 = vmatpush.msrb.mxu0 %v1624_v62  ;;  %281 = vmatpush.msrb.mxu1 %v1629_v63 }
  0x27   :  { %2365 = vst [vmem:[#allocation27_spill] sm:$0xff] %v1605_v59  ;;  %v1653_v59 = vld [vmem:[%s2261_s2 + $0x2e8] sm:$0xff]  ;;  %302 = vmatpush.msrb.mxu2 %v1636_v55  ;;  %321 = vmatpush.msrb.mxu3 %v1641_v57 }
  0x28   :  { %2366 = vst [vmem:[#allocation28_spill] sm:$0xff] %v1612_v60  ;;  %v1660_v60 = vld [vmem:[%s2261_s2 + $0x360] sm:$0xff]  ;;  %263 = vmatpush.msrb.mxu0 %v1648_v58  ;;  %282 = vmatpush.msrb.mxu1 %v1653_v59 }
  0x29   :  { %2367 = vst [vmem:[#allocation29_spill] sm:$0xff] %v1617_v61  ;;  %v1665_v61 = vld [vmem:[%s2261_s2 + $0x3e8] sm:$0xff]  ;;  %303 = vmatpush.msrb.mxu2 %v1660_v60 }
  0x2a   :  { %2368 = vst [vmem:[#allocation30_spill] sm:$0xff] %v1624_v62  ;;  %v1672_v62 = vld [vmem:[%s2261_s2 + $0x258] sm:$0xff]  ;;  %322 = vmatpush.msrb.mxu3 %v1665_v61 }
  0x2b   :  { %2369 = vst [vmem:[#allocation31_spill] sm:$0xff] %v1629_v63  ;;  %v1677_v63 = vld [vmem:[%s2261_s2 + $0x2e0] sm:$0xff]  ;;  %264 = vmatpush.msrb.mxu0 %v1672_v62 }
  0x2c   :  { %2370 = vst [vmem:[#allocation32_spill] sm:$0xff] %v1636_v55  ;;  %v1684_v55 = vld [vmem:[%s2261_s2 + $0x358] sm:$0xff]  ;;  %283 = vmatpush.msrb.mxu1 %v1677_v63 }
  0x2d   :  { %2371 = vst [vmem:[#allocation33_spill] sm:$0xff] %v1641_v57  ;;  %v1689_v57 = vld [vmem:[%s2261_s2 + $0x3e0] sm:$0xff]  ;;  %304 = vmatpush.msrb.mxu2 %v1684_v55 }
  0x2e   :  { %2372 = vst [vmem:[#allocation34_spill] sm:$0xff] %v1648_v58  ;;  %v1696_v58 = vld [vmem:[%s2261_s2 + $0x250] sm:$0xff]  ;;  %323 = vmatpush.msrb.mxu3 %v1689_v57 }
  0x2f   :  { %2373 = vst [vmem:[#allocation35_spill] sm:$0xff] %v1653_v59  ;;  %v1701_v59 = vld [vmem:[%s2261_s2 + $0x2d8] sm:$0xff]  ;;  %265 = vmatpush.msrb.mxu0 %v1696_v58  ;;  %305 = vmatpush.msrb.mxu2 %v1706_v54 }
  0x30   :  { %2374 = vst [vmem:[#allocation36_spill] sm:$0xff] %v1660_v60  ;;  %v1718_v60 = vld [vmem:[%s2261_s2 + $0x248] sm:$0xff]  ;;  %284 = vmatpush.msrb.mxu1 %v1701_v59 }
  0x31   :  { %2375 = vst [vmem:[#allocation37_spill] sm:$0xff] %v1665_v61  ;;  %v1713_v61 = vld [vmem:[%s2261_s2 + $0x3d8] sm:$0xff]  ;;  %266 = vmatpush.msrb.mxu0 %v1718_v60 }
  0x32   :  { %2376 = vst [vmem:[#allocation38_spill] sm:$0xff] %v1672_v62  ;;  %v1735_v62 = vld [vmem:[%s2261_s2 + $0x348] sm:$0xff]  ;;  %324 = vmatpush.msrb.mxu3 %v1713_v61 }
  0x33   :  { %2377 = vst [vmem:[#allocation39_spill] sm:$0xff] %v1677_v63  ;;  %v1730_v63 = vld [vmem:[%s2261_s2 + $0x2d0] sm:$0xff] }
  0x34   :  { %2378 = vst [vmem:[#allocation40_spill] sm:$0xff] %v1684_v55  ;;  %v1753_v55 = vld [vmem:[%s2261_s2 + $0x2c8] sm:$0xff]  ;;  %285 = vmatpush.msrb.mxu1 %v1730_v63 }
  0x35   :  { %2379 = vst [vmem:[#allocation41_spill] sm:$0xff] %v1689_v57  ;;  %v1748_v57 = vld [vmem:[%s2261_s2 + $0x240] sm:$0xff] }
  0x36   :  { %2380 = vst [vmem:[#allocation42_spill] sm:$0xff] %v1696_v58 }
  0x37   :  { %2381 = vst [vmem:[#allocation43_spill] sm:$0xff] %v1701_v59  ;;  %v1770_v59 = vld [vmem:[%s2260_s1 + $0x8] sm:$0xff] }
  0x38   :  { %2382 = vst [vmem:[#allocation44_spill] sm:$0xff] %v1706_v54  ;;  %v1777_v54 = vld [vmem:[%s2261_s2 + $0x238] sm:$0xff] }
  0x39   :  { %2383 = vst [vmem:[#allocation45_spill] sm:$0xff] %v1713_v61  ;;  %v1782_v61 = vld [vmem:[%s2261_s2 + $0x2c0] sm:$0xff] }
  0x3a   :  { %2384 = vst [vmem:[#allocation46_spill] sm:$0xff] %v1718_v60 }
  0x3b   :  { %2385 = vst [vmem:[#allocation47_spill] sm:$0xff] %v1723_v56 }
  0x3c   :  { %2386 = vst [vmem:[#allocation48_spill] sm:$0xff] %v1730_v63 }
  0x3d   :  { %2387 = vst [vmem:[#allocation49_spill] sm:$0xff] %v1735_v62 }
  0x3e   :  { %2388 = vst [vmem:[#allocation50_spill] sm:$0xff] %v1740_v51 }
  0x3f   :  { %161 = vst [vmem:[#allocation1] ss:$4 sm:$0xff] %v1723_v56  ;;  %v1765_v56 = vld [vmem:[%s2261_s2 + $0x3c8] sm:$0xff] }
  0x40   :  { %2389 = vst [vmem:[#allocation51_spill] sm:$0xff] %v1748_v57 }
  0x41   :  { %2390 = vst [vmem:[#allocation52_spill] sm:$0xff] %v1753_v55 }
  0x42   :  { %2391 = vst [vmem:[#allocation53_spill] sm:$0xff] %v1758_v53 }
  0x43   :  { %2392 = vst [vmem:[#allocation54_spill] sm:$0xff] %v1765_v56 }
  0x44   :  { %2393 = vst [vmem:[#allocation55_spill] sm:$0xff] %v1770_v59 }
  0x45   :  { %2394 = vst [vmem:[#allocation56_spill] sm:$0xff] %v1777_v54 }
  0x46   :  { %2395 = vst [vmem:[#allocation57_spill] sm:$0xff] %v1782_v61 }
  0x47   :  { %163 = vst [vmem:[#allocation1 + $0x20] ss:$4 sm:$0xff] %v1770_v59 }
  0x48   :  { %12 = vsyncpa [#allocation3], 0  ;;  %306 = vmatpush.msrb.mxu2 %v1735_v62  ;;  %325 = vmatpush.msrb.mxu3 %v1740_v51  ;;  %v1790_v63 = vld [vmem:[%s2261_s2 + $0x338] sm:$0xff]  ;;  %v1795_v60 = vld [vmem:[%s2261_s2 + $0x3c0] sm:$0xff]  ;;  %vm527_vm0 = vcmask 1043456   ;;  %vm523_vm1 = vcmask 31744  }
  0x49   :  { %2396 = vst [vmem:[#allocation58_spill] sm:$0xff] %v1790_v63  ;;  %v1800_v58 = vld [vmem:[%s2261_s2 + $0x230] sm:$0xff]  ;;  %267 = vmatpush.msrb.mxu0 %v1748_v57  ;;  %286 = vmatpush.msrb.mxu1 %v1753_v55  ;;  %v1807_v59 = vld [vmem:[%s2261_s2 + $0x2b8] sm:$0xff]  ;;  %v1824_v55 = vld [vmem:[%s2261_s2 + $0x228] sm:$0xff]  ;;  %vm559_vm2 = vcmask 261120   ;;  %s1162_s21 = smov 124  }
  0x4a   :  { %2397 = vst [vmem:[#allocation59_spill] sm:$0xff] %v1795_v60  ;;  %v1812_v51 = vld [vmem:[%s2261_s2 + $0x330] sm:$0xff]  ;;  %v1817_v62 = vld [vmem:[%s2261_s2 + $0x3b8] sm:$0xff]  ;;  %307 = vmatpush.msrb.mxu2 %v1758_v53  ;;  %326 = vmatpush.msrb.mxu3 %v1765_v56  ;;  %v1834_v50 = vld [vmem:[%s2259_s0] sm:$0xff]  ;;  %s1163_s22 = smov 4   ;;  %vm1035_vm7 = vcmask 1041408  }
  0x4b   :  { %2398 = vst [vmem:[#allocation60_spill] sm:$0xff] %v1800_v58  ;;  %v1829_v57 = vld [vmem:[%s2261_s2 + $0x2b0] sm:$0xff]  ;;  %268 = vmatpush.msrb.mxu0 %v1777_v54  ;;  %287 = vmatpush.msrb.mxu1 %v1782_v61  ;;  %v1841_v56 = vld [vmem:[%s2261_s2 + $0x328] sm:$0xff]  ;;  %v164_v47 = vld.sshfl [vmem:[#allocation1] sm:$0xff pattern:$0x73625140] }
  0x4c   :  { %2399 = vst [vmem:[#allocation61_spill] sm:$0xff] %v1807_v59  ;;  %v1846_v53 = vld [vmem:[%s2261_s2 + $0x3b0] sm:$0xff]  ;;  %308 = vmatpush.msrb.mxu2 %v1790_v63  ;;  %327 = vmatpush.msrb.mxu3 %v1795_v60  ;;  %v1853_v61 = vld [vmem:[%s2261_s2 + $0x220] sm:$0xff]  ;;  %v1858_v54 = vld [vmem:[%s2261_s2 + $0x2a8] sm:$0xff]  ;;  %vm1037_vm8 = vcmask 1045508   ;;  %s1082_s26 = sshll.u32 %s2266_s7, 4  ;;  %s1083_s26 = int_to_ptr.hbm [resolvable:$true] %s1082_s26 }
  0x4d   :  { %2400 = vst [vmem:[#allocation62_spill] sm:$0xff] %v1812_v51  ;;  %v166_v52 = vld.sshfl [vmem:[#allocation1 + $0x10] sm:$0xff pattern:$0x73625140]  ;;  %269 = vmatpush.msrb.mxu0 %v1800_v58  ;;  %288 = vmatpush.msrb.mxu1 %v1807_v59  ;;  %v1865_v60 = vld [vmem:[%s2261_s2 + $0x320] sm:$0xff]  ;;  %v1870_v63 = vld [vmem:[%s2261_s2 + $0x3a8] sm:$0xff] }
  0x4e   :  { %2401 = vst [vmem:[#allocation63_spill] sm:$0xff] %v1817_v62  ;;  %v167_v49 = vld.sshfl [vmem:[#allocation1 + $0x18] sm:$0xff pattern:$0x73625140]  ;;  %v1876_v48 = vld [vmem:[%s2259_s0 + $0x8] sm:$0xff]  ;;  %309 = vmatpush.msrb.mxu2 %v1812_v51  ;;  %328 = vmatpush.msrb.mxu3 %v1817_v62  ;;  %v1900_v51 = vld [vmem:[%s2261_s2 + $0x2a0] sm:$0xff] }
  0x4f   :  { %2402 = vst [vmem:[#allocation64_spill] sm:$0xff] %v1834_v50  ;;  %v165_v46 = vld.sshfl [vmem:[#allocation1 + $0x8] sm:$0xff pattern:$0x73625140]  ;;  %270 = vmatpush.msrb.mxu0 %v1824_v55  ;;  %289 = vmatpush.msrb.mxu1 %v1829_v57  ;;  %v1895_v62 = vld [vmem:[%s2261_s2 + $0x218] sm:$0xff] }
  0x50   :  { %2403 = vst [vmem:[#allocation65_spill] sm:$0xff] %v1841_v56  ;;  %v1880_v59 = vld.sshfl [vmem:[#allocation1 + $0x30] sm:$0xff pattern:$0x73625140]  ;;  %310 = vmatpush.msrb.mxu2 %v1841_v56  ;;  %329 = vmatpush.msrb.mxu3 %v1846_v53  ;;  %v1913_v56 = vld [vmem:[%s2261_s2 + $0x3a0] sm:$0xff] }
  0x51   :  { %2404 = vst [vmem:[#allocation66_spill] sm:$0xff] %v1846_v53  ;;  %v1882_v58 = vld.sshfl [vmem:[#allocation1 + $0x20] sm:$0xff pattern:$0x73625140]  ;;  %271 = vmatpush.msrb.mxu0 %v1853_v61  ;;  %290 = vmatpush.msrb.mxu1 %v1858_v54  ;;  %v1908_v53 = vld [vmem:[%s2261_s2 + $0x318] sm:$0xff] }
  0x52   :  { %2405 = vst [vmem:[#allocation67_spill] sm:$0xff] %v1858_v54  ;;  %v1886_v43 = vld.sshfl [vmem:[#allocation1 + $0x38] sm:$0xff pattern:$0x73625140]  ;;  %311 = vmatpush.msrb.mxu2 %v1865_v60  ;;  %330 = vmatpush.msrb.mxu3 %v1870_v63 }
  0x53   :  { %2406 = vst [vmem:[#allocation68_spill] sm:$0xff] %v1865_v60  ;;  %v1925_v54 = vld [vmem:[%s2261_s2 + $0x298] sm:$0xff]  ;;  %272 = vmatpush.msrb.mxu0 %v1895_v62  ;;  %291 = vmatpush.msrb.mxu1 %v1900_v51  ;;  %v1932_v60 = vld [vmem:[%s2261_s2 + $0x310] sm:$0xff] }
  0x54   :  { %2407 = vst [vmem:[#allocation69_spill] sm:$0xff] %v1870_v63  ;;  %v1937_v63 = vld [vmem:[%s2261_s2 + $0x398] sm:$0xff]  ;;  %312 = vmatpush.msrb.mxu2 %v1908_v53  ;;  %331 = vmatpush.msrb.mxu3 %v1913_v56 }
  0x55   :  { %342 = vst [vmem:[#allocation1] ss:$4 sm:$0xff] %v1834_v50  ;;  %v1888_v50 = vld.sshfl [vmem:[#allocation1 + $0x28] sm:$0xff pattern:$0x73625140]  ;;  %292 = vmatpush.msrb.mxu1 %v1925_v54  ;;  %236 = vmatmul.f32.vlgmr.msra.gmra.mxu2 %v166_v52 }
  0x56   :  { %2408 = vst [vmem:[#allocation70_spill] sm:$0xff] %v1876_v48  ;;  %313 = vmatpush.msrb.mxu2 %v1932_v60  ;;  %332 = vmatpush.msrb.mxu3 %v1937_v63  ;;  %v2457_v52 = vld [vmem:[#allocation43_spill] sm:$0xff] }
  0x57   :  { %2409 = vst [vmem:[#allocation71_spill] sm:$0xff] %v1895_v62  ;;  %v1944_v62 = vld [vmem:[%s2261_s2 + $0x208] sm:$0xff]  ;;  %196 = vmatmul.f32.vlgmr.msra.gmra.mxu0 %v164_v47  ;;  %256 = vmatmul.f32.vlgmr.msra.gmra.mxu3 %v167_v49  ;;  %v2454_v47 = vld [vmem:[#allocation40_spill] sm:$0xff]  ;;  %v2455_v49 = vld [vmem:[#allocation41_spill] sm:$0xff] }
  0x58   :  { %2410 = vst [vmem:[#allocation72_spill] sm:$0xff] %v1900_v51  ;;  %v1949_v51 = vld [vmem:[%s2261_s2 + $0x290] sm:$0xff]  ;;  %216 = vmatmul.f32.vlgmr.msra.gmra.mxu1 %v165_v46 }
  0x59   :  { %344 = vst [vmem:[#allocation1 + $0x20] ss:$4 sm:$0xff] %v1876_v48  ;;  %v1920_v48 = vld [vmem:[%s2261_s2 + $0x210] sm:$0xff]  ;;  %293 = vmatpush.msrb.mxu1 %v1949_v51 }
  0x5a   :  { %2411 = vst [vmem:[#allocation73_spill] sm:$0xff] %v1908_v53  ;;  %273 = vmatpush.msrb.mxu0 %v1920_v48  ;;  %v1956_v53 = vld [vmem:[%s2261_s2 + $0x308] sm:$0xff] }
  0x5b   :  { %2412 = vst [vmem:[#allocation74_spill] sm:$0xff] %v1913_v56  ;;  %v1961_v56 = vld [vmem:[%s2261_s2 + $0x390] sm:$0xff]  ;;  %314 = vmatpush.msrb.mxu2 %v1956_v53 }
  0x5c   :  { %2413 = vst [vmem:[#allocation75_spill] sm:$0xff] %v1920_v48  ;;  %v1968_v48 = vld [vmem:[%s2261_s2 + $0x200] sm:$0xff]  ;;  %274 = vmatpush.msrb.mxu0 %v1944_v62  ;;  %333 = vmatpush.msrb.mxu3 %v1961_v56  ;;  %v2019_v46 = vld.sshfl [vmem:[#allocation1 + $0x8] sm:$0xff pattern:$0x73625140] }
  0x5d   :  { %2414 = vst [vmem:[#allocation76_spill] sm:$0xff] %v1925_v54  ;;  %v1975_v54 = vld [vmem:[%s2261_s2 + $0x288] sm:$0xff] }
  0x5e   :  { %2415 = vst [vmem:[#allocation77_spill] sm:$0xff] %v1932_v60  ;;  %v1980_v60 = vld [vmem:[%s2261_s2 + $0x300] sm:$0xff]  ;;  %275 = vmatpush.msrb.mxu0 %v1968_v48  ;;  %294 = vmatpush.msrb.mxu1 %v1975_v54 }
  0x5f   :  { %2416 = vst [vmem:[#allocation78_spill] sm:$0xff] %v1944_v62  ;;  %v1987_v62 = vld [vmem:[%s2261_s2 + $0x388] sm:$0xff]  ;;  %315 = vmatpush.msrb.mxu2 %v1980_v60  ;;  %276 = vmatmul.f32.vlgmr.msrb.gmra.mxu0 %v1882_v58  ;;  %v2458_v58 = vld [vmem:[#allocation44_spill] sm:$0xff] }
  0x60   :  { %2417 = vst [vmem:[#allocation79_spill] sm:$0xff] %v1949_v51  ;;  %v1995_v51 = vld [vmem:[%s2261_s2 + $0x280] sm:$0xff]  ;;  %334 = vmatpush.msrb.mxu3 %v1987_v62  ;;  %361 = vmatpush.msra.mxu0 %v1208_v0 }
  0x61   :  { %2418 = vst [vmem:[#allocation80_spill] sm:$0xff] %v1961_v56  ;;  %v2001_v56 = vld [vmem:[%s2261_s2 + $0x380] sm:$0xff]  ;;  %401 = vmatpush.msra.mxu2 %v1213_v1  ;;  %295 = vmatpush.msrb.mxu1 %v1995_v51  ;;  %v2015_v1 = vld.sshfl [vmem:[#allocation1 + $0x10] sm:$0xff pattern:$0x73625140] }
  0x62   :  { %335 = vmatpush.msrb.mxu3 %v2001_v56  ;;  %362 = vmatpush.msra.mxu0 %v1218_v2  ;;  %v2013_v0 = vld.sshfl [vmem:[#allocation1] sm:$0xff pattern:$0x73625140] }
  0x63   :  { %381 = vmatpush.msra.mxu1 %v1225_v3  ;;  %402 = vmatpush.msra.mxu2 %v1230_v4  ;;  %v2024_v2 = vld [vmem:[%s2265_s6] sm:$0xff]  ;;  %v2029_v3 = vld [vmem:[%s2265_s6 + $0x8] sm:$0xff]  ;;  %v348_v4 = vld.sshfl [vmem:[#allocation1 + $0x18] sm:$0xff pattern:$0x73625140] }
  0x64   :  { %421 = vmatpush.msra.mxu3 %v1235_v5  ;;  %363 = vmatpush.msra.mxu0 %v1242_v6  ;;  %631 = vst [vmem:[#allocation1] ss:$2 sm:$0xff] %v2024_v2  ;;  %v2419_v5 = vld [vmem:[#allocation5_spill] sm:$0xff]  ;;  %v2420_v6 = vld [vmem:[#allocation8_spill] sm:$0xff] }
  0x65   :  { %382 = vmatpush.msra.mxu1 %v1247_v7  ;;  %403 = vmatpush.msra.mxu2 %v1252_v8  ;;  %633 = vst [vmem:[#allocation1 + $0x10] ss:$2 sm:$0xff] %v2029_v3  ;;  %v2421_v7 = vld [vmem:[#allocation6_spill] sm:$0xff]  ;;  %v2422_v8 = vld [vmem:[#allocation9_spill] sm:$0xff] }
  0x66   :  { %422 = vmatpush.msra.mxu3 %v1259_v9  ;;  %316 = vmatmul.f32.vlgmr.msrb.gmra.mxu2 %v1880_v59  ;;  %v2423_v9 = vld [vmem:[#allocation7_spill] sm:$0xff]  ;;  %v2459_v59 = vld [vmem:[#allocation45_spill] sm:$0xff] }
  0x67   :  { %364 = vmatpush.msra.mxu0 %v1271_v11  ;;  %383 = vmatpush.msra.mxu1 %v1264_v10  ;;  %v2424_v10 = vld [vmem:[#allocation12_spill] sm:$0xff]  ;;  %v2425_v11 = vld [vmem:[#allocation10_spill] sm:$0xff] }
  0x68   :  { %404 = vmatpush.msra.mxu2 %v1276_v12  ;;  %423 = vmatpush.msra.mxu3 %v1281_v13  ;;  %v2426_v12 = vld [vmem:[#allocation13_spill] sm:$0xff]  ;;  %v2427_v13 = vld [vmem:[#allocation11_spill] sm:$0xff] }
  0x69   :  { %336 = vmatmul.f32.vlgmr.msrb.gmra.mxu3 %v1886_v43  ;;  %365 = vmatpush.msra.mxu0 %v1300_v16  ;;  %v2430_v16 = vld [vmem:[#allocation17_spill] sm:$0xff] }
  0x6a   :  { %384 = vmatpush.msra.mxu1 %v1288_v14  ;;  %405 = vmatpush.msra.mxu2 %v1305_v17  ;;  %v2428_v14 = vld [vmem:[#allocation16_spill] sm:$0xff]  ;;  %v2431_v17 = vld [vmem:[#allocation15_spill] sm:$0xff]  ;;  %v2451_v43 = vld [vmem:[#allocation37_spill] sm:$0xff] }
  0x6b   :  { %424 = vmatpush.msra.mxu3 %v1293_v15  ;;  %296 = vmatmul.f32.vlgmr.msrb.gmra.mxu1 %v1888_v50  ;;  %v2429_v15 = vld [vmem:[#allocation14_spill] sm:$0xff] }
  0x6c   :  { %366 = vmatpush.msra.mxu0 %v1324_v20  ;;  %385 = vmatpush.msra.mxu1 %v1312_v18  ;;  %v2432_v18 = vld [vmem:[#allocation20_spill] sm:$0xff]  ;;  %v2434_v20 = vld [vmem:[#allocation21_spill] sm:$0xff]  ;;  %v2456_v50 = vld [vmem:[#allocation42_spill] sm:$0xff] }
  0x6d   :  { %406 = vmatpush.msra.mxu2 %v1329_v21  ;;  %425 = vmatpush.msra.mxu3 %v1317_v19  ;;  %v2433_v19 = vld [vmem:[#allocation18_spill] sm:$0xff]  ;;  %v2435_v21 = vld [vmem:[#allocation19_spill] sm:$0xff] }
  0x6e   :  { %367 = vmatpush.msra.mxu0 %v1348_v24  ;;  %386 = vmatpush.msra.mxu1 %v1336_v22  ;;  %v2436_v22 = vld [vmem:[#allocation22_spill] sm:$0xff]  ;;  %v2438_v24 = vld [vmem:[#allocation24_spill] sm:$0xff] }
  0x6f   :  { %407 = vmatpush.msra.mxu2 %v1353_v25  ;;  %426 = vmatpush.msra.mxu3 %v1341_v23  ;;  %v2437_v23 = vld [vmem:[#allocation23_spill] sm:$0xff]  ;;  %v2439_v25 = vld [vmem:[#allocation25_spill] sm:$0xff] }
  0x70   :  { %368 = vmatpush.msra.mxu0 %v1372_v28  ;;  %387 = vmatpush.msra.mxu1 %v1360_v26  ;;  %v2096_v26 = vld.sshfl [vmem:[#allocation1 + $0x20] sm:$0xff pattern:$0x73625140] }
  0x71   :  { %408 = vmatpush.msra.mxu2 %v1377_v29  ;;  %427 = vmatpush.msra.mxu3 %v1365_v27  ;;  %v2098_v27 = vld.sshfl [vmem:[#allocation1 + $0x30] sm:$0xff pattern:$0x73625140]  ;;  %v2440_v28 = vld [vmem:[#allocation26_spill] sm:$0xff]  ;;  %v2441_v29 = vld [vmem:[#allocation27_spill] sm:$0xff] }
  0x72   :  { %369 = vmatpush.msra.mxu0 %v1396_v32  ;;  %388 = vmatpush.msra.mxu1 %v1384_v30  ;;  %v2102_v30 = vld.sshfl [vmem:[#allocation1 + $0x28] sm:$0xff pattern:$0x73625140]  ;;  %v2112_v32 = vld [vmem:[%s2265_s6 + $0x18] sm:$0xff] }
  0x73   :  { %409 = vmatpush.msra.mxu2 %v1401_v33  ;;  %428 = vmatpush.msra.mxu3 %v1389_v31  ;;  %v2107_v31 = vld [vmem:[%s2265_s6 + $0x10] sm:$0xff] }
  0x74   :  { %370 = vmatpush.msra.mxu0 %v1420_v36  ;;  %389 = vmatpush.msra.mxu1 %v1408_v34  ;;  %v2442_v33 = vld [vmem:[#allocation28_spill] sm:$0xff]  ;;  %v2443_v34 = vld [vmem:[#allocation29_spill] sm:$0xff]  ;;  %635 = vst [vmem:[#allocation1 + $0x20] ss:$2 sm:$0xff] %v2107_v31  ;;  %v2444_v36 = vld [vmem:[#allocation30_spill] sm:$0xff] }
  0x75   :  { %410 = vmatpush.msra.mxu2 %v1425_v37  ;;  %429 = vmatpush.msra.mxu3 %v1413_v35  ;;  %v352_v35 = vld.sshfl [vmem:[#allocation1 + $0x38] sm:$0xff pattern:$0x73625140]  ;;  %v2445_v37 = vld [vmem:[#allocation31_spill] sm:$0xff] }
  0x76   :  { %371 = vmatpush.msra.mxu0 %v1444_v40  ;;  %390 = vmatpush.msra.mxu1 %v1432_v38  ;;  %637 = vst [vmem:[#allocation1 + $0x30] ss:$2 sm:$0xff] %v2112_v32  ;;  %v2446_v38 = vld [vmem:[#allocation32_spill] sm:$0xff]  ;;  %v2448_v40 = vld [vmem:[#allocation34_spill] sm:$0xff] }
  0x77   :  { %411 = vmatpush.msra.mxu2 %v1449_v41  ;;  %430 = vmatpush.msra.mxu3 %v1437_v39  ;;  %v2447_v39 = vld [vmem:[#allocation33_spill] sm:$0xff]  ;;  %v2449_v41 = vld [vmem:[#allocation35_spill] sm:$0xff] }
  0x78   :  { %372 = vmatpush.msra.mxu0 %v1468_v44  ;;  %391 = vmatpush.msra.mxu1 %v1456_v42  ;;  %v2450_v42 = vld [vmem:[#allocation36_spill] sm:$0xff]  ;;  %v2452_v44 = vld [vmem:[#allocation38_spill] sm:$0xff] }
  0x79   :  { %412 = vmatpush.msra.mxu2 %v1473_v45  ;;  %431 = vmatpush.msra.mxu3 %v2419_v5  ;;  %v2453_v45 = vld [vmem:[#allocation39_spill] sm:$0xff] }
  0x7a   :  { %373 = vmatpush.msra.mxu0 %v2420_v6  ;;  %392 = vmatpush.msra.mxu1 %v2421_v7  ;;  %v2464_v5 = vld [vmem:[#allocation51_spill] sm:$0xff]  ;;  %v2465_v6 = vld [vmem:[#allocation52_spill] sm:$0xff]  ;;  %v2466_v7 = vld [vmem:[#allocation53_spill] sm:$0xff] }
  0x7b   :  { %413 = vmatpush.msra.mxu2 %v2422_v8  ;;  %432 = vmatpush.msra.mxu3 %v2423_v9  ;;  %v2467_v8 = vld [vmem:[#allocation54_spill] sm:$0xff]  ;;  %v2468_v9 = vld [vmem:[#allocation56_spill] sm:$0xff] }
  0x7c   :  { %374 = vmatpush.msra.mxu0 %v2424_v10  ;;  %393 = vmatpush.msra.mxu1 %v2425_v11  ;;  %v2469_v10 = vld [vmem:[#allocation57_spill] sm:$0xff]  ;;  %v2470_v11 = vld [vmem:[#allocation58_spill] sm:$0xff] }
  0x7d   :  { %414 = vmatpush.msra.mxu2 %v2426_v12  ;;  %433 = vmatpush.msra.mxu3 %v2427_v13  ;;  %v2471_v12 = vld [vmem:[#allocation59_spill] sm:$0xff]  ;;  %v2472_v13 = vld [vmem:[#allocation60_spill] sm:$0xff] }
  0x7e   :  { %375 = vmatpush.msra.mxu0 %v2428_v14  ;;  %394 = vmatpush.msra.mxu1 %v2429_v15  ;;  %v2473_v14 = vld [vmem:[#allocation61_spill] sm:$0xff]  ;;  %v2474_v15 = vld [vmem:[#allocation62_spill] sm:$0xff] }
  0x7f   :  { %415 = vmatpush.msra.mxu2 %v2430_v16  ;;  %434 = vmatpush.msra.mxu3 %v2431_v17  ;;  %v2475_v16 = vld [vmem:[#allocation63_spill] sm:$0xff]  ;;  %v2476_v17 = vld [vmem:[#allocation65_spill] sm:$0xff] }
  0x80   :  { %376 = vmatpush.msra.mxu0 %v2432_v18  ;;  %395 = vmatpush.msra.mxu1 %v2433_v19  ;;  %v2477_v18 = vld [vmem:[#allocation66_spill] sm:$0xff]  ;;  %v2478_v19 = vld [vmem:[#allocation67_spill] sm:$0xff] }
  0x81   :  { %416 = vmatpush.msra.mxu2 %v2434_v20  ;;  %435 = vmatpush.msra.mxu3 %v2435_v21  ;;  %v2479_v20 = vld [vmem:[#allocation68_spill] sm:$0xff]  ;;  %v2480_v21 = vld [vmem:[#allocation69_spill] sm:$0xff] }
  0x82   :  { %377 = vmatmul.f32.vlgmr.msra.gmra.mxu0 %v2013_v0  ;;  %417 = vmatmul.f32.vlgmr.msra.gmra.mxu2 %v2015_v1  ;;  %v2460_v0 = vld [vmem:[#allocation46_spill] sm:$0xff]  ;;  %v2461_v1 = vld [vmem:[#allocation48_spill] sm:$0xff] }
  0x83   :  { %441 = vmatpush.msrb.mxu0 %v2436_v22  ;;  %481 = vmatpush.msrb.mxu2 %v2437_v23  ;;  %v2481_v22 = vld [vmem:[#allocation71_spill] sm:$0xff]  ;;  %v2482_v23 = vld [vmem:[#allocation72_spill] sm:$0xff] }
  0x84   :  { %396 = vmatpush.msra.mxu1 %v2438_v24  ;;  %436 = vmatpush.msra.mxu3 %v2439_v25  ;;  %v2483_v24 = vld [vmem:[#allocation73_spill] sm:$0xff]  ;;  %v2486_v25 = vld [vmem:[#allocation76_spill] sm:$0xff] }
  0x85   :  { %397 = vmatmul.f32.vlgmr.msra.gmra.mxu1 %v2019_v46  ;;  %437 = vmatmul.f32.vlgmr.msra.gmra.mxu3 %v348_v4  ;;  %v2462_v46 = vld [vmem:[#allocation49_spill] sm:$0xff]  ;;  %v2463_v4 = vld [vmem:[#allocation50_spill] sm:$0xff] }
  0x86   :  { %442 = vmatpush.msrb.mxu0 %v2440_v28  ;;  %461 = vmatpush.msrb.mxu1 %v2441_v29  ;;  %v2487_v28 = vld [vmem:[#allocation77_spill] sm:$0xff]  ;;  %v2489_v29 = vld [vmem:[#allocation79_spill] sm:$0xff] }
  0x87   :  { %482 = vmatpush.msrb.mxu2 %v2442_v33  ;;  %501 = vmatpush.msrb.mxu3 %v2443_v34  ;;  %v2490_v33 = vld [vmem:[#allocation80_spill] sm:$0xff] }
  0x88   :  { %443 = vmatpush.msrb.mxu0 %v2444_v36  ;;  %462 = vmatpush.msrb.mxu1 %v2445_v37  ;;  %v553_v37 = vld [vmem:[%s2263_s4 + $0x10] sm:$0xff] }
  0x89   :  { %483 = vmatpush.msrb.mxu2 %v2446_v38  ;;  %502 = vmatpush.msrb.mxu3 %v2447_v39  ;;  %v552_v39 = vld [vmem:[%s2263_s4 + $0x8] sm:$0xff] }
  0x8a   :  { %444 = vmatpush.msrb.mxu0 %v2448_v40  ;;  %463 = vmatpush.msrb.mxu1 %v2449_v41  ;;  %v551_v41 = vld [vmem:[%s2263_s4] sm:$0xff] }
  0x8b   :  { %484 = vmatpush.msrb.mxu2 %v2450_v42  ;;  %503 = vmatpush.msrb.mxu3 %v2451_v43 }
  0x8c   :  { %445 = vmatpush.msrb.mxu0 %v2452_v44  ;;  %464 = vmatpush.msrb.mxu1 %v2453_v45 }
  0x8d   :  { %485 = vmatpush.msrb.mxu2 %v2454_v47  ;;  %504 = vmatpush.msrb.mxu3 %v2455_v49 }
  0x8e   :  { %446 = vmatpush.msrb.mxu0 %v2456_v50  ;;  %465 = vmatpush.msrb.mxu1 %v2457_v52 }
  0x8f   :  { %486 = vmatpush.msrb.mxu2 %v2458_v58  ;;  %505 = vmatpush.msrb.mxu3 %v2459_v59 }
  0x90   :  { %447 = vmatpush.msrb.mxu0 %v2460_v0  ;;  %466 = vmatpush.msrb.mxu1 %v2461_v1 }
  0x91   :  { %487 = vmatpush.msrb.mxu2 %v2462_v46  ;;  %506 = vmatpush.msrb.mxu3 %v2463_v4 }
  0x92   :  { %448 = vmatpush.msrb.mxu0 %v2464_v5  ;;  %467 = vmatpush.msrb.mxu1 %v2465_v6 }
  0x93   :  { %488 = vmatpush.msrb.mxu2 %v2466_v7  ;;  %507 = vmatpush.msrb.mxu3 %v2467_v8 }
  0x94   :  { %449 = vmatpush.msrb.mxu0 %v2468_v9  ;;  %468 = vmatpush.msrb.mxu1 %v2469_v10  ;;  %v1129_v10 = vld [vmem:[%s2264_s5] ss:$0 sm:$0xff]  ;;  %s1164_s5 = smov [#allocation2]  }
  0x95   :  { %489 = vmatpush.msrb.mxu2 %v2470_v11  ;;  %508 = vmatpush.msrb.mxu3 %v2471_v12  ;;  %s1080_s23 = sshll.u32 %s1164_s5, 4  ;;  %s1081_s23 = int_to_ptr.vmem [resolvable:$true] %s1080_s23 }
  0x96   :  { %450 = vmatpush.msrb.mxu0 %v2472_v13  ;;  %469 = vmatpush.msrb.mxu1 %v2473_v14 }
  0x97   :  { %490 = vmatpush.msrb.mxu2 %v2474_v15  ;;  %509 = vmatpush.msrb.mxu3 %v2475_v16 }
  0x98   :  { %451 = vmatpush.msrb.mxu0 %v1824_v55  ;;  %470 = vmatpush.msrb.mxu1 %v1829_v57  ;;  %v2484_v55 = vld [vmem:[#allocation74_spill] sm:$0xff]  ;;  %v2485_v57 = vld [vmem:[#allocation75_spill] sm:$0xff] }
  0x99   :  { %491 = vmatpush.msrb.mxu2 %v2476_v17  ;;  %510 = vmatpush.msrb.mxu3 %v2477_v18 }
  0x9a   :  { %452 = vmatpush.msrb.mxu0 %v1853_v61  ;;  %471 = vmatpush.msrb.mxu1 %v2478_v19  ;;  %v2488_v61 = vld [vmem:[#allocation78_spill] sm:$0xff] }
  0x9b   :  { %492 = vmatpush.msrb.mxu2 %v2479_v20  ;;  %511 = vmatpush.msrb.mxu3 %v2480_v21  ;;  %v638_v20 = vld.sshfl [vmem:[#allocation1] sm:$0xff pattern:$0x75316420]  ;;  %v639_v21 = vld.sshfl [vmem:[#allocation1 + $0x8] sm:$0xff pattern:$0x75316420] }
  0x9c   :  { %453 = vmatpush.msrb.mxu0 %v2481_v22  ;;  %472 = vmatpush.msrb.mxu1 %v2482_v23  ;;  %828 = vst [vmem:[#allocation1] ss:$2 sm:$0xff] %v2024_v2  ;;  %v640_v22 = vld.sshfl [vmem:[#allocation1 + $0x10] sm:$0xff pattern:$0x75316420] }
  0x9d   :  { %493 = vmatpush.msrb.mxu2 %v2483_v24  ;;  %512 = vmatpush.msrb.mxu3 %v2484_v55  ;;  %v641_v24 = vld.sshfl [vmem:[#allocation1 + $0x18] sm:$0xff pattern:$0x75316420]  ;;  %v642_v55 = vld.sshfl [vmem:[#allocation1 + $0x20] sm:$0xff pattern:$0x75316420] }
  0x9e   :  { %454 = vmatpush.msrb.mxu0 %v2485_v57  ;;  %473 = vmatpush.msrb.mxu1 %v2486_v25  ;;  %830 = vst [vmem:[#allocation1 + $0x10] ss:$2 sm:$0xff] %v2029_v3  ;;  %v643_v57 = vld.sshfl [vmem:[#allocation1 + $0x28] sm:$0xff pattern:$0x75316420] }
  0x9f   :  { %494 = vmatpush.msrb.mxu2 %v2487_v28  ;;  %513 = vmatpush.msrb.mxu3 %v1937_v63  ;;  %v644_v25 = vld.sshfl [vmem:[#allocation1 + $0x30] sm:$0xff pattern:$0x75316420]  ;;  %832 = vst [vmem:[#allocation1 + $0x20] ss:$2 sm:$0xff] %v2107_v31 }
  0xa0   :  { %455 = vmatpush.msrb.mxu0 %v2488_v61  ;;  %474 = vmatpush.msrb.mxu1 %v2489_v29  ;;  %v645_v2 = vld.sshfl [vmem:[#allocation1 + $0x38] sm:$0xff pattern:$0x75316420] }
  0xa1   :  { %495 = vmatpush.msrb.mxu2 %v1956_v53  ;;  %514 = vmatpush.msrb.mxu3 %v2490_v33  ;;  %834 = vst [vmem:[#allocation1 + $0x30] ss:$2 sm:$0xff] %v2112_v32 }
  0xa2   :  { %456 = vmatpush.msrb.mxu0 %v1968_v48  ;;  %475 = vmatpush.msrb.mxu1 %v1975_v54 }
  0xa3   :  { %496 = vmatpush.msrb.mxu2 %v1980_v60  ;;  %515 = vmatpush.msrb.mxu3 %v1987_v62  ;;  %v522_v62 = vld [vmem:[%s2262_s3] sm:$0xf] }
  0xa4   :  { %457 = vmatmul.f32.vlgmr.msrb.gmra.mxu0 %v2096_v26  ;;  %497 = vmatmul.f32.vlgmr.msrb.gmra.mxu2 %v2098_v27 }
  0xa5   :  { %476 = vmatpush.msrb.mxu1 %v1995_v51  ;;  %516 = vmatpush.msrb.mxu3 %v2001_v56 }
  0xa6   :  { %477 = vmatmul.f32.vlgmr.msrb.gmra.mxu1 %v2102_v30  ;;  %517 = vmatmul.f32.vlgmr.msrb.gmra.mxu3 %v352_v35  ;;  %v554_v35 = vld [vmem:[%s2263_s4 + $0x18] sm:$0xff] }
  0xa7   :  { %1091 = vmatpush.msk.msra.mxu0 %vm527_vm0, %v522_v62  ;;  %575 = vmatpush.msra.mxu1 %v554_v35  ;;  %v836_v62 = vld.sshfl [vmem:[#allocation1 + $0x8] sm:$0xff pattern:$0x75316420] }
  0xa8   :  { %1094 = vmatpush.msk.msra.mxu2 %vm527_vm0, %v638_v20  ;;  %1096 = vmatpush.msk.msra.mxu3 %vm527_vm0, %v639_v21  ;;  %v840_v35 = vld.sshfl [vmem:[#allocation1 + $0x28] sm:$0xff pattern:$0x75316420] }
  0xa9   :  { %576 = vmatpush.msra.mxu1 %v553_v37  ;;  %1098 = vmatpush.msk.msrb.mxu0 %vm527_vm0, %v640_v22  ;;  %v839_v37 = vld.sshfl [vmem:[#allocation1 + $0x20] sm:$0xff pattern:$0x75316420]  ;;  %v2492_v21 = vld [vmem:[#allocation47_spill] sm:$0xff] }
  0xaa   :  { %1102 = vmatpush.msk.msrb.mxu2 %vm527_vm0, %v642_v55  ;;  %1104 = vmatpush.msk.msrb.mxu3 %vm527_vm0, %v643_v57 }
  0xab   :  { %577 = vmatpush.msra.mxu1 %v552_v39  ;;  %v842_v39 = vld.sshfl [vmem:[#allocation1 + $0x38] sm:$0xff pattern:$0x75316420] }
  0xad   :  { %578 = vmatpush.msra.mxu1 %v551_v41 }
  0xaf   :  { %1100 = vmatpush.msk.msrb.mxu1 %vm527_vm0, %v641_v24 }
  0xd4   :  { %v197_v63 = vpop.f32.mrf.mxu0 }
  0xd5   :  { %v217_v53 = vpop.f32.mrf.mxu1 }
  0xd6   :  { %v218_v48 = vadd.f32 %v217_v53, %v197_v63 }
  0xd8   :  { %v237_v34 = vpop.f32.mrf.mxu2 }
  0xd9   :  { %v238_v54 = vadd.f32 %v237_v34, %v218_v48 }
  0xda   :  { %v257_v36 = vpop.f32.mrf.mxu3 }
  0xdb   :  { %v258_v60 = vadd.f32 %v257_v36, %v238_v54 }
  0xdc   :  { %v277_v26 = vpop.f32.mrf.mxu0 }
  0xdd   :  { %v278_v51 = vadd.f32 %v277_v26, %v258_v60  ;;  %v835_v26 = vld.sshfl [vmem:[#allocation1] sm:$0xff pattern:$0x75316420] }
  0xe8   :  { %v297_v56 = vpop.f32.mrf.mxu1 }
  0xe9   :  { %v298_v27 = vadd.f32 %v297_v56, %v278_v51  ;;  %v317_v30 = vpop.f32.mrf.mxu2  ;;  %v837_v56 = vld.sshfl [vmem:[#allocation1 + $0x10] sm:$0xff pattern:$0x75316420] }
  0xeb   :  { %v318_v38 = vadd.f32 %v317_v30, %v298_v27  ;;  %v838_v27 = vld.sshfl [vmem:[#allocation1 + $0x18] sm:$0xff pattern:$0x75316420] }
  0xec   :  { %v337_v40 = vpop.f32.mrf.mxu3 }
  0xed   :  { %v338_v43 = vadd.f32 %v337_v40, %v318_v38  ;;  %v841_v38 = vld.sshfl [vmem:[#allocation1 + $0x30] sm:$0xff pattern:$0x75316420] }
  0xff   :  { %v378_v42 = vpop.f32.mrf.mxu0 }
 0x100   :  { %v379_v44 = vadd.f32 %v378_v42, %v338_v43 }
 0x102   :  { %v398_v45 = vpop.f32.mrf.mxu1 }
 0x103   :  { %v399_v49 = vadd.f32 %v398_v45, %v379_v44 }
 0x105   :  { %v418_v47 = vpop.f32.mrf.mxu2 }
 0x106   :  { %v419_v50 = vadd.f32 %v418_v47, %v399_v49 }
 0x108   :  { %v438_v52 = vpop.f32.mrf.mxu3 }
 0x109   :  { %v439_v58 = vadd.f32 %v438_v52, %v419_v50 }
 0x121   :  { %v458_v59 = vpop.f32.mrf.mxu0 }
 0x122   :  { %v459_v0 = vadd.f32 %v458_v59, %v439_v58 }
 0x123   :  { %v478_v1 = vpop.f32.mrf.mxu1 }
 0x124   :  { %v479_v46 = vadd.f32 %v478_v1, %v459_v0 }
 0x127   :  { %v498_v4 = vpop.f32.mrf.mxu2 }
 0x128   :  { %v499_v5 = vadd.f32 %v498_v4, %v479_v46 }
 0x129   :  { %v518_v6 = vpop.f32.mrf.mxu3 }
 0x12a   :  { %v519_v7 = vadd.f32 %v518_v6, %v499_v5 }
 0x12c   :  { %v521_v8 = vmul.f32 0.00390625, %v519_v7 }
 0x12e   :  { %1092 = vmatmul.msk.f32.vlgmr.msra.gmra.mxu0 %vm523_vm1, %v521_v8 }
 0x12f   :  { %1106 = vmatpush.msk.msra.mxu0 %vm527_vm0, %v644_v25 }
 0x1ab   :  { %v548_v9 = vpop.f32.mrf.mxu0 }
 0x1ac   :  { %1093 = vmatmul.msk.f32.vlgmr.msra.gmra.mxu1 %vm559_vm2, %v548_v9 }
 0x1ad   :  { %1108 = vmatpush.msk.msra.mxu1 %vm527_vm0, %v645_v2 }
 0x229   :  { %v580_v11 = vpop.f32.mrf.mxu1 }
 0x22a   :  { %v581_v12 = vadd.f32 %v1129_v10, %v580_v11 }
 0x22c   :  { %584 = vrot.lane.b32.xlu0 %v581_v12, %s1162_s21 }
 0x29e   :  { %v585_v13 = vpop.permute.xlu0 %584 }
 0x29f   :  { %v587_v14 = vmax.f32 %v581_v12, %v585_v13 }
 0x2a1   :  { %592 = vrot.lane.b32.xlu0 %v587_v14, %s1163_s22  ;;  %v588_v19 = vsub.f32 %v581_v12, %v587_v14 }
 0x2a3   :  { %v589_v23 = vmul.f32 1.442695, %v588_v19  ;;  %v2491_v19 = vld [vmem:[#allocation64_spill] sm:$0xff] }
 0x313   :  { %v593_v15 = vpop.permute.xlu0 %592 }
 0x314   :  { %v595_v16 = vsub.f32 %v581_v12, %v593_v15 }
 0x316   :  { %v596_v17 = vmul.f32 1.442695, %v595_v16 }
 0x318   :  { %1130 = vpow2.f32 %v596_v17 }
 0x319   :  { %1132 = vpow2.f32 %v589_v23 }
 0x31e   :  { %v1131_v18 = vpop.eup %1130 }
 0x31f   :  { %599 = vrot.lane.b32.xlu1 %v1131_v18, %s1162_s21  ;;  %v1133_v28 = vpop.eup %1132 }
 0x391   :  { %v600_v61 = vpop.permute.xlu1 %599 }
 0x392   :  { %v602_v3 = vadd.f32 %v1133_v28, %v600_v61 }
 0x394   :  { %1134 = vrcp.f32 %v602_v3  ;;  %v614_v63 = vand.u32 2147483648, %v602_v3  ;;  %v612_v34 = vand.u32 2147483647, %v602_v3  ;;  %vm608_vm4 = vweird.f32 %v602_v3 }
 0x396   :  { %v615_v54 = vor.u32 1.1754944e-38, %v614_v63  ;;  %vm613_vm6 = vcmp.eq.f32.partialorder %v612_v34, 8.507059e+37  ;;  %v2493_v63 = vld [vmem:[#allocation55_spill] sm:$0xff]  ;;  %v2494_v34 = vld [vmem:[#allocation70_spill] sm:$0xff] }
 0x39a   :  { %v1135_v29 = vpop.eup %1134 }
 0x39b   :  { %v604_v33 = vmul.f32 %v1135_v29, %v602_v3  ;;  %vm609_vm3 = vweird.f32 %v1135_v29 }
 0x39c   :  { %vm610_vm5 = vmor %vm608_vm4, %vm609_vm3 }
 0x39d   :  { %v605_v53 = vsub.f32 1.0, %v604_v33 }
 0x39f   :  { %v606_v48 = vmul.f32 %v1135_v29, %v605_v53 }
 0x3a1   :  { %v607_v31 = vadd.f32 %v1135_v29, %v606_v48 }
 0x3a3   :  { %v611_v36 = vsel %vm610_vm5, %v1135_v29, %v607_v31 }
 0x3a4   :  { %v616_v60 = vsel %vm613_vm6, %v615_v54, %v611_v36 }
 0x3a5   :  { %619 = vrot.lane.b32.xlu1 %v616_v60, %s1163_s22  ;;  %v617_v32 = vmul.f32 %v1133_v28, %v616_v60 }
 0x3a7   :  { %1095 = vmatmul.msk.f32.vlgmr.msra.gmra.mxu2 %vm523_vm1, %v617_v32  ;;  %1097 = vmatmul.msk.f32.vlgmr.msra.gmra.mxu3 %vm523_vm1, %v617_v32 }
 0x3a8   :  { %1099 = vmatmul.msk.f32.vlgmr.msrb.gmra.mxu0 %vm523_vm1, %v617_v32  ;;  %1101 = vmatmul.msk.f32.vlgmr.msrb.gmra.mxu1 %vm523_vm1, %v617_v32 }
 0x3a9   :  { %1112 = vmatpush.msk.msra.mxu3 %vm527_vm0, %v836_v62  ;;  %1110 = vmatpush.msk.msra.mxu2 %vm527_vm0, %v835_v26 }
 0x3aa   :  { %1114 = vmatpush.msk.msrb.mxu0 %vm527_vm0, %v837_v56  ;;  %1116 = vmatpush.msk.msrb.mxu1 %vm527_vm0, %v838_v27 }
 0x3af   :  { %1103 = vmatmul.msk.f32.vlgmr.msrb.gmra.mxu2 %vm523_vm1, %v617_v32  ;;  %1105 = vmatmul.msk.f32.vlgmr.msrb.gmra.mxu3 %vm523_vm1, %v617_v32 }
 0x3b0   :  { %1107 = vmatmul.msk.f32.vlgmr.msra.gmra.mxu0 %vm523_vm1, %v617_v32  ;;  %1109 = vmatmul.msk.f32.vlgmr.msra.gmra.mxu1 %vm523_vm1, %v617_v32 }
 0x3b1   :  { %1120 = vmatpush.msk.msrb.mxu3 %vm527_vm0, %v840_v35  ;;  %1118 = vmatpush.msk.msrb.mxu2 %vm527_vm0, %v839_v37 }
 0x3b2   :  { %1122 = vmatpush.msk.msra.mxu0 %vm527_vm0, %v841_v38  ;;  %1124 = vmatpush.msk.msra.mxu1 %vm527_vm0, %v842_v39 }
 0x417   :  { %v620_v51 = vpop.permute.xlu1 %619 }
 0x418   :  { %v622_v30 = vmul.f32 %v1131_v18, %v620_v51 }
 0x41a   :  { %826 = vrot.lane.b32.xlu2 %v622_v30, %s1162_s21 }
 0x425   :  { %v722_v41 = vpop.f32.mrf.mxu0  ;;  %v742_v42 = vpop.f32.mrf.mxu1 }
 0x426   :  { %v1030_v0 = vrot.slane %v722_v41, 4  ;;  %v1031_v1 = vrot.slane %v742_v42, 2 }
 0x428   :  { %v1038_v8 = vsel %vm1037_vm8, %v1030_v0, %v1031_v1 }
 0x42a   :  { %v682_v43 = vpop.f32.mrf.mxu2  ;;  %v702_v44 = vpop.f32.mrf.mxu3 }
 0x42b   :  { %v1029_v52 = vrot.slane %v702_v44, 6 }
 0x42d   :  { %v802_v45 = vpop.f32.mrf.mxu0  ;;  %v822_v47 = vpop.f32.mrf.mxu1  ;;  %v1036_v46 = vsel %vm1035_vm7, %v682_v43, %v1029_v52 }
 0x42e   :  { %v1039_v10 = vsel %vm527_vm0, %v1036_v46, %v1038_v8  ;;  %v1033_v17 = vrot.slane %v802_v45, 4  ;;  %v1034_v18 = vrot.slane %v822_v47, 2 }
 0x42f   :  { %v1045_v20 = vmul.f32 %v1039_v10, %v2491_v19 }
 0x430   :  { %v1041_v2 = vsel %vm1037_vm8, %v1033_v17, %v1034_v18 }
 0x432   :  { %v762_v49 = vpop.f32.mrf.mxu2  ;;  %v782_v50 = vpop.f32.mrf.mxu3 }
 0x433   :  { %v1032_v11 = vrot.slane %v782_v50, 6 }
 0x435   :  { %v1040_v23 = vsel %vm1035_vm7, %v762_v49, %v1032_v11 }
 0x436   :  { %v1042_v61 = vsel %vm527_vm0, %v1040_v23, %v1041_v2 }
 0x437   :  { %v1046_v31 = vmul.f32 %v1042_v61, %v2494_v34 }
 0x474   :  { %v827_v40 = vpop.permute.xlu2 %826 }
 0x475   :  { %1111 = vmatmul.msk.f32.vlgmr.msra.gmra.mxu2 %vm523_vm1, %v827_v40  ;;  %1113 = vmatmul.msk.f32.vlgmr.msra.gmra.mxu3 %vm523_vm1, %v827_v40 }
 0x476   :  { %1115 = vmatmul.msk.f32.vlgmr.msrb.gmra.mxu0 %vm523_vm1, %v827_v40  ;;  %1117 = vmatmul.msk.f32.vlgmr.msrb.gmra.mxu1 %vm523_vm1, %v827_v40 }
 0x47d   :  { %1119 = vmatmul.msk.f32.vlgmr.msrb.gmra.mxu2 %vm523_vm1, %v827_v40  ;;  %1121 = vmatmul.msk.f32.vlgmr.msrb.gmra.mxu3 %vm523_vm1, %v827_v40 }
 0x47e   :  { %1123 = vmatmul.msk.f32.vlgmr.msra.gmra.mxu0 %vm523_vm1, %v827_v40  ;;  %1125 = vmatmul.msk.f32.vlgmr.msra.gmra.mxu1 %vm523_vm1, %v827_v40 }
 0x4f3   :  { %v918_v58 = vpop.f32.mrf.mxu0  ;;  %v938_v59 = vpop.f32.mrf.mxu1 }
 0x4f4   :  { %v1056_v4 = vrot.slane %v918_v58, 4  ;;  %v1057_v5 = vrot.slane %v938_v59, 2 }
 0x4f6   :  { %v1062_v12 = vsel %vm1037_vm8, %v1056_v4, %v1057_v5 }
 0x4f8   :  { %v878_v6 = vpop.f32.mrf.mxu2  ;;  %v898_v7 = vpop.f32.mrf.mxu3 }
 0x4f9   :  { %v1055_v9 = vrot.slane %v898_v7, 6 }
 0x4fb   :  { %v1061_v13 = vsel %vm1035_vm7, %v878_v6, %v1055_v9  ;;  %v998_v15 = vpop.f32.mrf.mxu0  ;;  %v1018_v16 = vpop.f32.mrf.mxu1 }
 0x4fc   :  { %v1063_v14 = vsel %vm527_vm0, %v1061_v13, %v1062_v12  ;;  %v1059_v24 = vrot.slane %v998_v15, 4  ;;  %v1060_v55 = vrot.slane %v1018_v16, 2 }
 0x4fd   :  { %v1069_v22 = vmul.f32 %v1063_v14, %v2492_v21 }
 0x4fe   :  { %v1065_v29 = vsel %vm1037_vm8, %v1059_v24, %v1060_v55 }
 0x4ff   :  { %v1071_v57 = vadd.f32 %v1069_v22, %v1045_v20 }
 0x500   :  { %v978_v25 = vpop.f32.mrf.mxu3  ;;  %v958_v3 = vpop.f32.mrf.mxu2 }
 0x501   :  { %v1058_v28 = vrot.slane %v978_v25, 6  ;;  %1073 = vst [vmem:[#allocation2] sm:$0xff] %v1071_v57 }
 0x503   :  { %v1064_v33 = vsel %vm1035_vm7, %v958_v3, %v1058_v28 }
 0x504   :  { %v1066_v53 = vsel %vm527_vm0, %v1064_v33, %v1065_v29 }
 0x505   :  { %v1070_v48 = vmul.f32 %v1066_v53, %v2493_v63 }
 0x507   :  { %v1072_v54 = vadd.f32 %v1070_v48, %v1046_v31 }
 0x509   :  { %1074 = vst [vmem:[#allocation2 + $0x8] sm:$0xff] %v1072_v54 }
 0x50a   :  { %1085 = dma.vmem_to_hbm [thread:$0]  %s1081_s23, 256, %s1083_s26, [#allocation3]  }
 0x50b   :  { %1160 = dma.done.wait [#allocation3], 256  }
 0x50c   :  { %1161 = vsyncadd [#allocation3], 4294967040 }
 0x50d   :  { %1090 = vsyncpa [#allocation3], 1 }

</bundles_post_ra>
